<compile_context>
chip_gen: v6e
topology: v6e:2x2x1
jax: 0.10.0
libtpu: 0.0.40
codegen_flags: <defaults>
</compile_context>

<pallas_src>
import functools
import math

import jax
import jax.numpy as jnp
from jax import lax
from jax.experimental import pallas as pl
from jax.experimental.pallas import tpu as pltpu


def _rotate_pairs(x, c, s, d_k):
    """Adjacent-pair rotation, full lane width.

    out[2k]   = c[2k]   * x[2k]   - s[2k]   * x[2k+1]
    out[2k+1] = s[2k+1] * x[2k]   + c[2k+1] * x[2k+1]
    x, c, s: (tile_S, d_k) f32; c/s already expanded so lanes 2k and 2k+1
    carry the value for frequency k.
    """
    j = lax.broadcasted_iota(jnp.int32, (1, d_k), 1)
    is_even = (j & 1) == 0
    # pair swap: x_swap[2k] = x[2k+1], x_swap[2k+1] = x[2k]  (two XLU rolls)
    x_next = pltpu.roll(x, shift=d_k - 1, axis=1)   # x[(j+1) % d_k] at lane j
    x_prev = pltpu.roll(x, shift=1, axis=1)         # x[(j-1) % d_k] at lane j
    x_swap = jnp.where(is_even, x_next, x_prev)
    s_signed = jnp.where(is_even, -s, s)
    return c * x + s_signed * x_swap


def _rope_kernel_fused(pos_ref, x_ref, o_ref, *, d_k, neg_log_theta):
    # pos_ref: (tile_S, 1) f32 token positions; x_ref / o_ref: (tile_S, d_k).
    x = x_ref[...].astype(jnp.float32)
    pos = pos_ref[...]                                     # (tile_S, 1)
    j = lax.broadcasted_iota(jnp.int32, (1, d_k), 1)
    # frequency exponent 2*(j//2)/d_k == (j - (j & 1)) / d_k
    exponent = (j - (j & 1)).astype(jnp.float32) * (1.0 / d_k)
    inv_freq = jnp.exp(exponent * neg_log_theta)           # theta ** (-2k/d_k), (1, d_k)
    angle = pos * inv_freq                                 # (tile_S, d_k)
    c = jnp.cos(angle)
    s = jnp.sin(angle)
    o_ref[...] = _rotate_pairs(x, c, s, d_k).astype(o_ref.dtype)


def _rope_kernel_tables(x_ref, cos_ref, sin_ref, o_ref, *, d_k):
    # Fallback: cos/sin precomputed (full d_k width, pair-expanded) in XLA.
    x = x_ref[...].astype(jnp.float32)
    c = cos_ref[...].astype(jnp.float32)
    s = sin_ref[...].astype(jnp.float32)
    o_ref[...] = _rotate_pairs(x, c, s, d_k).astype(o_ref.dtype)


def _pick_tile_s(S, d_k, itemsize):
    # Largest seq tile that divides S, is a multiple of 8 and keeps the
    # double-buffered working set (x + out + pos) to a few MiB (v7x-safe).
    bytes_per_row = d_k * max(int(itemsize), 4)
    max_rows = max(8, (4 * 1024 * 1024) // bytes_per_row)
    for cand in (1024, 512, 256, 128, 64, 32, 16, 8):
        if cand <= max_rows and S % cand == 0:
            return cand
    return S  # S not a multiple of 8: whole-S block (== full dim, still legal)


def rope_forward(x, token_positions, *, theta: float, max_seq_len: int):
    """x: (..., S, d_k); token_positions: (..., S) int -> same shape as x."""
    *lead, S, d_k = x.shape
    assert d_k % 2 == 0
    B = 1
    for n in lead:
        B *= n
    x3 = x.reshape(B, S, d_k)                               # free reshape (no transpose)
    pos = jnp.broadcast_to(token_positions, tuple(lead) + (S,)).reshape(B, S)

    tile_s = _pick_tile_s(S, d_k, x.dtype.itemsize)
    grid = (B, S // tile_s)
    x_spec = pl.BlockSpec((None, tile_s, d_k), lambda b, s: (b, s, 0))
    out_spec = pl.BlockSpec((None, tile_s, d_k), lambda b, s: (b, s, 0))
    cparams = pltpu.CompilerParams(
        dimension_semantics=("parallel", "parallel"),
        vmem_limit_bytes=32 * 1024 * 1024,
    )
    out_shape = jax.ShapeDtypeStruct((B, S, d_k), x.dtype)

    try:
        # Primary path: only x + positions hit HBM; cos/sin computed on-chip.
        pos_f = pos.astype(jnp.float32).reshape(B, S, 1)
        pos_spec = pl.BlockSpec((None, tile_s, 1), lambda b, s: (b, s, 0))
        kernel = functools.partial(
            _rope_kernel_fused, d_k=d_k, neg_log_theta=-math.log(theta))
        out3 = pl.pallas_call(
            kernel,
            out_shape=out_shape,
            grid_spec=pltpu.PrefetchScalarGridSpec(
                num_scalar_prefetch=0,
                grid=grid,
                in_specs=[pos_spec, x_spec],
                out_specs=out_spec,
            ),
            compiler_params=cparams,
        )(pos_f, x3)
    except Exception:
        # Fallback (only if in-kernel sin/cos fails to lower): stream
        # full-width pair-expanded cos/sin tables; still transpose-free and
        # lane-dense.
        f_k = d_k // 2
        table_pos = jnp.arange(max_seq_len, dtype=jnp.float32)
        inv_freq = 1.0 / (theta ** (jnp.arange(f_k, dtype=jnp.float32) * 2.0 / d_k))
        angles = table_pos[:, None] * inv_freq[None, :]            # (L, f_k)
        cos_t = jnp.repeat(jnp.cos(angles), 2, axis=-1)            # (L, d_k)
        sin_t = jnp.repeat(jnp.sin(angles), 2, axis=-1)
        cos_pos = cos_t[pos]                                       # (B, S, d_k)
        sin_pos = sin_t[pos]
        kernel = functools.partial(_rope_kernel_tables, d_k=d_k)
        out3 = pl.pallas_call(
            kernel,
            out_shape=out_shape,
            grid_spec=pltpu.PrefetchScalarGridSpec(
                num_scalar_prefetch=0,
                grid=grid,
                in_specs=[x_spec, x_spec, x_spec],
                out_specs=out_spec,
            ),
            compiler_params=cparams,
        )(x3, cos_pos, sin_pos)

    return out3.reshape(*lead, S, d_k)


def rope_reference(x, token_positions, *, theta: float, max_seq_len: int):
    """Pure-JAX reference mirroring the PyTorch module exactly."""
    *lead, S, d_k = x.shape
    f_k = d_k // 2
    positions = jnp.arange(max_seq_len, dtype=jnp.float32)
    inv_freq = 1.0 / (theta ** (jnp.arange(f_k, dtype=jnp.float32) * 2.0 / d_k))
    angles = positions[:, None] * inv_freq[None, :]
    cos_t = jnp.cos(angles)[token_positions]                 # (..., S, f_k)
    sin_t = jnp.sin(angles)[token_positions]
    x_p = x.reshape(*lead, S, f_k, 2)
    xe, xo = x_p[..., 0], x_p[..., 1]
    out_e = cos_t * xe - sin_t * xo
    out_o = sin_t * xe + cos_t * xo
    return jnp.stack([out_e, out_o], axis=-1).reshape(*lead, S, d_k)


if __name__ == "__main__":
    theta = 10000.0
    max_seq_len = 64
    B, S, d_k = 2, 48, 128   # small, but multi-tile seq grid + lane-dense d_k

    key = jax.random.PRNGKey(0)
    kx, kp = jax.random.split(key)
    x = jax.random.normal(kx, (B, S, d_k), dtype=jnp.float32)
    token_positions = jax.random.randint(kp, (B, S), 0, max_seq_len, dtype=jnp.int32)

    out = rope_forward(x, token_positions, theta=theta, max_seq_len=max_seq_len)
    out = jax.block_until_ready(out)

    ref = rope_reference(x, token_positions, theta=theta, max_seq_len=max_seq_len)
    assert out.shape == (B, S, d_k)
    assert jnp.allclose(out, ref, atol=2e-4, rtol=2e-4), float(
        jnp.max(jnp.abs(out - ref)))

    print("KERNEL_OK")
</pallas_src>

<mosaic_0001>
module attributes {stable_mosaic.version = 11 : i64} {
  func.func @_rope_kernel_fused(%arg0: i32, %arg1: i32, %arg2: memref<1x16x1xf32, #tpu.memory_space<vmem>>, %arg3: memref<1x16x128xf32, #tpu.memory_space<vmem>>, %arg4: memref<1x16x128xf32, #tpu.memory_space<vmem>>) attributes {dimension_semantics = [#tpu.dimension_semantics<parallel>, #tpu.dimension_semantics<parallel>], iteration_bounds = array<i64: 2, 3>, scalar_prefetch = 0 : i64, scratch_operands = 0 : i64, tpu.core_type = #tpu.core_type<tc>, window_params = [{transform_indices = @transform_0, window_bounds = array<i64: 1, 16, 1>}, {transform_indices = @transform_1, window_bounds = array<i64: 1, 16, 128>}, {transform_indices = @transform_2, window_bounds = array<i64: 1, 16, 128>}]} {
    %c0 = arith.constant 0 : index
    %c0_0 = arith.constant 0 : index
    %c0_1 = arith.constant 0 : index
    %0 = vector.load %arg3[%c0, %c0_0, %c0_1] : memref<1x16x128xf32, #tpu.memory_space<vmem>>, vector<1x16x128xf32>
    %1 = vector.shape_cast %0 : vector<1x16x128xf32> to vector<16x128xf32>
    %c0_2 = arith.constant 0 : index
    %c0_3 = arith.constant 0 : index
    %c0_4 = arith.constant 0 : index
    %2 = vector.load %arg2[%c0_2, %c0_3, %c0_4] : memref<1x16x1xf32, #tpu.memory_space<vmem>>, vector<1x16x1xf32>
    %3 = vector.shape_cast %2 : vector<1x16x1xf32> to vector<16x1xf32>
    %4 = tpu.iota {dimensions = array<i32: 1>} : vector<1x128xi32>
    %c1_i32 = arith.constant 1 : i32
    %5 = vector.broadcast %c1_i32 : i32 to vector<1x128xi32>
    %6 = arith.andi %4, %5 : vector<1x128xi32>
    %7 = arith.subi %4, %6 : vector<1x128xi32>
    %8 = arith.sitofp %7 : vector<1x128xi32> to vector<1x128xf32>
    %cst = arith.constant 7.812500e-03 : f32
    %9 = vector.broadcast %cst : f32 to vector<1x128xf32>
    %10 = arith.mulf %8, %9 : vector<1x128xf32>
    %cst_5 = arith.constant -9.21034049 : f32
    %11 = vector.broadcast %cst_5 : f32 to vector<1x128xf32>
    %12 = arith.mulf %10, %11 : vector<1x128xf32>
    %13 = math.exp %12 : vector<1x128xf32>
    %14 = vector.broadcast %3 : vector<16x1xf32> to vector<16x128xf32>
    %15 = vector.broadcast %13 : vector<1x128xf32> to vector<16x128xf32>
    %16 = arith.mulf %14, %15 : vector<16x128xf32>
    %17 = math.cos %16 : vector<16x128xf32>
    %18 = math.sin %16 : vector<16x128xf32>
    %19 = tpu.iota {dimensions = array<i32: 1>} : vector<1x128xi32>
    %c1_i32_6 = arith.constant 1 : i32
    %20 = vector.broadcast %c1_i32_6 : i32 to vector<1x128xi32>
    %21 = arith.andi %19, %20 : vector<1x128xi32>
    %c0_i32 = arith.constant 0 : i32
    %22 = vector.broadcast %c0_i32 : i32 to vector<1x128xi32>
    %23 = arith.cmpi eq, %21, %22 : vector<1x128xi32>
    %c127_i32 = arith.constant 127 : i32
    %24 = tpu.dynamic_rotate %1 by %c127_i32 dim 1 : vector<16x128xf32>, i32 -> vector<16x128xf32>
    %c1_i32_7 = arith.constant 1 : i32
    %25 = tpu.dynamic_rotate %1 by %c1_i32_7 dim 1 : vector<16x128xf32>, i32 -> vector<16x128xf32>
    %26 = vector.shape_cast %23 : vector<1x128xi1> to vector<1x128xi1>
    %27 = vector.broadcast %26 : vector<1x128xi1> to vector<16x128xi1>
    %28 = arith.select %27, %24, %25 : vector<16x128xi1>, vector<16x128xf32>
    %cst_8 = arith.constant 0.000000e+00 : f32
    %29 = vector.broadcast %cst_8 : f32 to vector<16x128xf32>
    %30 = arith.subf %29, %18 : vector<16x128xf32>
    %31 = vector.shape_cast %23 : vector<1x128xi1> to vector<1x128xi1>
    %32 = vector.broadcast %31 : vector<1x128xi1> to vector<16x128xi1>
    %33 = arith.select %32, %30, %18 : vector<16x128xi1>, vector<16x128xf32>
    %34 = arith.mulf %17, %1 : vector<16x128xf32>
    %35 = arith.mulf %33, %28 : vector<16x128xf32>
    %36 = arith.addf %34, %35 : vector<16x128xf32>
    %c0_9 = arith.constant 0 : index
    %c0_10 = arith.constant 0 : index
    %c0_11 = arith.constant 0 : index
    %37 = vector.load %arg4[%c0_9, %c0_10, %c0_11] : memref<1x16x128xf32, #tpu.memory_space<vmem>>, vector<1x16x128xf32>
    %38 = vector.shape_cast %37 : vector<1x16x128xf32> to vector<16x128xf32>
    %39 = vector.shape_cast %36 : vector<16x128xf32> to vector<1x16x128xf32>
    tpu.vector_store %arg4[%c0_9, %c0_10, %c0_11], %39 {strides = array<i32>} : memref<1x16x128xf32, #tpu.memory_space<vmem>>, vector<1x16x128xf32>,
    return
  }
  func.func @transform_0(%arg0: i32, %arg1: i32) -> (i32, i32, i32) {
    %c0_i32 = arith.constant 0 : i32
    %c0_i32_0 = arith.constant 0 : i32
    return %arg0, %arg1, %c0_i32 : i32, i32, i32
  }
  func.func @transform_1(%arg0: i32, %arg1: i32) -> (i32, i32, i32) {
    %c0_i32 = arith.constant 0 : i32
    %c0_i32_0 = arith.constant 0 : i32
    return %arg0, %arg1, %c0_i32 : i32, i32, i32
  }
  func.func @transform_2(%arg0: i32, %arg1: i32) -> (i32, i32, i32) {
    %c0_i32 = arith.constant 0 : i32
    %c0_i32_0 = arith.constant 0 : i32
    return %arg0, %arg1, %c0_i32 : i32, i32, i32
  }
}

module attributes {stable_mosaic.version = 11 : i64} {
  func.func @_rope_kernel_tables(%arg0: i32, %arg1: i32, %arg2: memref<1x16x128xf32, #tpu.memory_space<vmem>>, %arg3: memref<1x16x128xf32, #tpu.memory_space<vmem>>, %arg4: memref<1x16x128xf32, #tpu.memory_space<vmem>>, %arg5: memref<1x16x128xf32, #tpu.memory_space<vmem>>) attributes {dimension_semantics = [#tpu.dimension_semantics<parallel>, #tpu.dimension_semantics<parallel>], iteration_bounds = array<i64: 2, 3>, scalar_prefetch = 0 : i64, scratch_operands = 0 : i64, tpu.core_type = #tpu.core_type<tc>, window_params = [{transform_indices = @transform_0, window_bounds = array<i64: 1, 16, 128>}, {transform_indices = @transform_1, window_bounds = array<i64: 1, 16, 128>}, {transform_indices = @transform_2, window_bounds = array<i64: 1, 16, 128>}, {transform_indices = @transform_3, window_bounds = array<i64: 1, 16, 128>}]} {
    %c0 = arith.constant 0 : index
    %c0_0 = arith.constant 0 : index
    %c0_1 = arith.constant 0 : index
    %0 = vector.load %arg2[%c0, %c0_0, %c0_1] : memref<1x16x128xf32, #tpu.memory_space<vmem>>, vector<1x16x128xf32>
    %1 = vector.shape_cast %0 : vector<1x16x128xf32> to vector<16x128xf32>
    %c0_2 = arith.constant 0 : index
    %c0_3 = arith.constant 0 : index
    %c0_4 = arith.constant 0 : index
    %2 = vector.load %arg3[%c0_2, %c0_3, %c0_4] : memref<1x16x128xf32, #tpu.memory_space<vmem>>, vector<1x16x128xf32>
    %3 = vector.shape_cast %2 : vector<1x16x128xf32> to vector<16x128xf32>
    %c0_5 = arith.constant 0 : index
    %c0_6 = arith.constant 0 : index
    %c0_7 = arith.constant 0 : index
    %4 = vector.load %arg4[%c0_5, %c0_6, %c0_7] : memref<1x16x128xf32, #tpu.memory_space<vmem>>, vector<1x16x128xf32>
    %5 = vector.shape_cast %4 : vector<1x16x128xf32> to vector<16x128xf32>
    %6 = tpu.iota {dimensions = array<i32: 1>} : vector<1x128xi32>
    %c1_i32 = arith.constant 1 : i32
    %7 = vector.broadcast %c1_i32 : i32 to vector<1x128xi32>
    %8 = arith.andi %6, %7 : vector<1x128xi32>
    %c0_i32 = arith.constant 0 : i32
    %9 = vector.broadcast %c0_i32 : i32 to vector<1x128xi32>
    %10 = arith.cmpi eq, %8, %9 : vector<1x128xi32>
    %c127_i32 = arith.constant 127 : i32
    %11 = tpu.dynamic_rotate %1 by %c127_i32 dim 1 : vector<16x128xf32>, i32 -> vector<16x128xf32>
    %c1_i32_8 = arith.constant 1 : i32
    %12 = tpu.dynamic_rotate %1 by %c1_i32_8 dim 1 : vector<16x128xf32>, i32 -> vector<16x128xf32>
    %13 = vector.shape_cast %10 : vector<1x128xi1> to vector<1x128xi1>
    %14 = vector.broadcast %13 : vector<1x128xi1> to vector<16x128xi1>
    %15 = arith.select %14, %11, %12 : vector<16x128xi1>, vector<16x128xf32>
    %cst = arith.constant 0.000000e+00 : f32
    %16 = vector.broadcast %cst : f32 to vector<16x128xf32>
    %17 = arith.subf %16, %5 : vector<16x128xf32>
    %18 = vector.shape_cast %10 : vector<1x128xi1> to vector<1x128xi1>
    %19 = vector.broadcast %18 : vector<1x128xi1> to vector<16x128xi1>
    %20 = arith.select %19, %17, %5 : vector<16x128xi1>, vector<16x128xf32>
    %21 = arith.mulf %3, %1 : vector<16x128xf32>
    %22 = arith.mulf %20, %15 : vector<16x128xf32>
    %23 = arith.addf %21, %22 : vector<16x128xf32>
    %c0_9 = arith.constant 0 : index
    %c0_10 = arith.constant 0 : index
    %c0_11 = arith.constant 0 : index
    %24 = vector.load %arg5[%c0_9, %c0_10, %c0_11] : memref<1x16x128xf32, #tpu.memory_space<vmem>>, vector<1x16x128xf32>
    %25 = vector.shape_cast %24 : vector<1x16x128xf32> to vector<16x128xf32>
    %26 = vector.shape_cast %23 : vector<16x128xf32> to vector<1x16x128xf32>
    tpu.vector_store %arg5[%c0_9, %c0_10, %c0_11], %26 {strides = array<i32>} : memref<1x16x128xf32, #tpu.memory_space<vmem>>, vector<1x16x128xf32>,
    return
  }
  func.func @transform_0(%arg0: i32, %arg1: i32) -> (i32, i32, i32) {
    %c0_i32 = arith.constant 0 : i32
    %c0_i32_0 = arith.constant 0 : i32
    return %arg0, %arg1, %c0_i32 : i32, i32, i32
  }
  func.func @transform_1(%arg0: i32, %arg1: i32) -> (i32, i32, i32) {
    %c0_i32 = arith.constant 0 : i32
    %c0_i32_0 = arith.constant 0 : i32
    return %arg0, %arg1, %c0_i32 : i32, i32, i32
  }
  func.func @transform_2(%arg0: i32, %arg1: i32) -> (i32, i32, i32) {
    %c0_i32 = arith.constant 0 : i32
    %c0_i32_0 = arith.constant 0 : i32
    return %arg0, %arg1, %c0_i32 : i32, i32, i32
  }
  func.func @transform_3(%arg0: i32, %arg1: i32) -> (i32, i32, i32) {
    %c0_i32 = arith.constant 0 : i32
    %c0_i32_0 = arith.constant 0 : i32
    return %arg0, %arg1, %c0_i32 : i32, i32, i32
  }
}

</mosaic_0001>

<bundles_post_ra>
// kernel: tpu_custom_call.1
= control target key start
LH: loop header
LB: loop body
LE: loop exit
PB: predicated region body
PF: predicated region fallthrough
CT: control target
= control target key end

     0   :  { %7 = vsyncpa [#allocation3], 0  ;;  %s1283_s0 = inlined_call_operand.vmem [shape: f32[2,48,1], index: 0, kind: input, shape index: {}]   ;;  %s1284_s1 = inlined_call_operand.vmem [shape: f32[2,48,128], index: 1, kind: input, shape index: {}]   ;;  %s1285_s2 = inlined_call_operand.hbm [shape: f32[2,48,128], index: 2, kind: output, shape index: {}]  }
   0x1   :  { %9 = vsyncpa [#allocation3 + $0x1], 0  ;;  %s1044_s9 = smov 0   ;;  %s1046_s10 = smov 0  }
   0x2   :  { %s1048_s11 = smov 0   ;;  %s1050_s12 = smov 0  }
   0x3   :  { %s1052_s13 = smov 0   ;;  %s1054_s14 = smov 0  }
   0x4   :  { %s1056_s15 = smov 0   ;;  %s1058_s16 = smov 0  }
   0x5 LB: > { %s789_s17 = sadd.s32 4294967295, %s1015_s16   ;;  %s790_s18 = sadd.s32 4294967294, %s1015_s16   ;;  %s1015_s16 = sphi %s1058_s16, %s15_s16   ;;  %s1011_s15 = sphi %s1056_s15, %s1296_s15   ;;  %s1007_s14 = sphi %s1054_s14, %s1295_s14   ;;  %s1003_s13 = sphi %s1052_s13, %s1294_s13   ;;  %s999_s12 = sphi %s1050_s12, %s1293_s12   ;;  %s995_s11 = sphi %s1048_s11, %s1292_s11   ;;  %s991_s10 = sphi %s1046_s10, %s1291_s10   ;;  %s987_s9 = sphi %s1044_s9, %s1290_s9  }
   0x6   : > { %s24_s19 = sadd.s32 1, %s1007_s14  ;;  %s27_s20 = sadd.s32 1, %s1011_s15 }
   0x7   : > { %p25_p0 = scmp.ge.s32.totalorder %s24_s19, 3  ;;  %p102_p1 = scmp.ne.s32.totalorder %s995_s11, %s991_s10 }
   0x8   : > { %p103_p2 = scmp.eq.s32.totalorder %s789_s17, 5  ;;  %p108_p5 = scmp.ne.s32.totalorder %s991_s10, %s987_s9 }
   0x9   : > { %s1298_s19 = smov (%p25_p0, %s24_s19), 0  ;;  %s1300_s20 = smov (!%p25_p0, %s27_s20), %s1011_s15 }
   0xa   : > { %s88_s21 = ssub.s32 %s1007_s14, %s1298_s19  ;;  %p1095_p3 = por %p103_p2, %p102_p1 }
   0xb   : > { %p29_p4 = scmp.ge.s32.totalorder %s1300_s20, 2  ;;  %p109_p6 = scmp.eq.s32.totalorder %s790_s18, 5 }
   0xc   : > { %p793_p7 = scmp.ge.s32.totalorder %s1015_s16, 1  ;;  %p153_p9 = scmp.lt.s32.totalorder %s1015_s16, 7 }
   0xd   : > { %s1302_s20 = smov (%p29_p4, %s1300_s20), 0  ;;  %p1104_p8 = por %p109_p6, %p108_p5 }
   0xe   : > { %s87_s24 = ssub.s32 %s1011_s15, %s1302_s20  ;;  %s92_s25 = sadd.s32 1, %s995_s11 }
   0xf   : > { %s89_s26 = sor.u32 %s88_s21, %s87_s24  ;;  %p154_p10 = pnand %p793_p7, %p153_p9 }
  0x10   : > { %p90_p11 = scmp.eq.s32.totalorder %s89_s26, 0  ;;  %s1116_s28 = sshll.u32 (!%p154_p10), %s999_s12, 1 }
  0x11   : > { %157 = sbr.rel (%p154_p10) target bundleno = 270 (0x10e), region = 28  ;;  %p189_p12 = scmp.lt.s32.totalorder (!%p154_p10), %s1003_s13, 1 }
  0x12   : > { %s1113_s27 = scalar_select %p90_p11, %s995_s11, %s92_s25  }
  0x13   : > { %p191_p13 = scmp.lt.s32.totalorder (!%p154_p10), %s1116_s28, 5  ;;  %s1018_s21 = smov (!%p154_p10), 127  }
  0x14   : > { %s1019_s24 = smov (!%p154_p10), 1   ;;  %s185_s25 = sand.u32 (!%p154_p10), 1, %s991_s10  }
  0x15   : > { %s794_s26 = sshll.u32 (!%p154_p10), %s185_s25, 4  ;;  %s1232_s7 = scalar_lea.sflag (!%p154_p10), [#allocation3], %s185_s25 }
  0x16   : > { %v1017_v0 = vmov 0   ;;  %s190_s29 = scalar_select %p189_p12, %s1003_s13, 1  ;;  %v213_v5 = vlaneseq  ;;  %v1020_v34 = vmov 683565275   ;;  %v1021_v38 = vmov 2475754826  }
  0x17   : > { %912 = vset.pattern.permute.xlu0 %v1017_v0  ;;  %s192_s30 = scalar_select %p191_p13, %s1116_s28, 5  ;;  %v1022_v40 = vmov 2131351028   ;;  %v1023_v42 = vmov 2102212464  }
  0x18   : > { %s820_s3 = smul.u32 6, %s190_s29  ;;  %v1136_v6 = vand.u32 127, %v213_v5  ;;  %v1024_v44 = vmov 920167782   ;;  %v1025_v51 = vmov 1326507024  }
  0x19   : > { %s829_s29 = smul.u32 6, %s1003_s13  ;;  %s1026_s17 = smov [#allocation2]  }
  0x1a   : > { %s194_s4 = sadd.s32 %s820_s3, %s192_s30  ;;  %v215_v7 = vand.u32 1, %v1136_v6  ;;  %s187_s30 = scalar_lea.vmem [#allocation2], %s794_s26 }
  0x1b   : > { %s796_s5 = sshll.u32 %s194_s4, 3  ;;  %s686_s3 = sadd.s32 %s829_s29, %s1116_s28 }
  0x1c   : > { %s196_s8 = scalar_lea.vmem %s1283_s0, %s796_s5  ;;  %s206_s12 = scalar_lea.vmem %s1284_s1, %s796_s5  ;;  %v216_v8 = vsub.s32 %v1136_v6, %v215_v7 }
  0x1d   : > { %v211_v1 = vld [vmem:[%s196_s8] sm:$0xff]  ;;  %v212_v3 = vld [vmem:[%s196_s8 + $0x8] sm:$0xff]  ;;  %s817_s13 = sshll.u32 %s686_s3, 7  ;;  %s689_s4 = sshll.u32 %s187_s30, 4  ;;  %s1228_s4 = int_to_ptr.vmem [resolvable:$true] %s689_s4 }
  0x1e   : > { %v1128_v2 = vld [vmem:[%s206_s12] sm:$0xff]  ;;  %224 = vperm.xlu0 %912, %v211_v1   ;;  %v1131_v4 = vld [vmem:[%s206_s12 + $0x8] sm:$0xff]  ;;  %v217_v9 = vcvt.s32.f32 %v216_v8  ;;  %s1225_s6 = scalar_lea.hbm %s1285_s2, %s817_s13  ;;  %s923_s8 = scalar_lea.vmem %s1228_s4, 256 }
  0x1f   : > { %649 = vrot.lane.b32.xlu1 %v1128_v2, %s1018_s21  ;;  %p924_p0 = scmp.ne.s32.totalorder %s1228_s4, %s923_s8  ;;  %s927_s18 = sshll.u32 %s1026_s17, 4  ;;  %s928_s18 = int_to_ptr.vmem [resolvable:$false] %s927_s18 }
  0x20   : > { %v218_v10 = vmul.f32 0.0078125, %v217_v9  ;;  %s929_s12 = scalar_lea.vmem %s928_s18, 512  ;;  %p930_p4 = scmp.lt.s32.totalorder %s1228_s4, %s928_s18 }
  0x21   : > { %p925_p1 = pnand %p924_p0, %p1095_p3  ;;  %p931_p5 = scmp.lt.s32.totalorder %s929_s12, %s923_s8 }
  0x22   : > { %229 = vperm.xlu0 %912, %v212_v3   ;;  %v219_v11 = vmul.f32 -9.2103405, %v218_v10 }
  0x23   : > { %651 = vrot.lane.b32.xlu1 %v1131_v4, %s1018_s21  ;;  %p926_p2 = pneg %p925_p1  ;;  %p932_p6 = por %p931_p5, %p930_p4 }
  0x24   : > { %v220_v12 = vmul.f32 1.442695, %v219_v11 }
  0x25   : > { %p933_p7 = pnand %p932_p6, %p926_p2 }
  0x26   : > { %653 = vrot.lane.b32.xlu0 %v1128_v2, %s1019_s24  ;;  %913 = vpow2.f32 %v220_v12 }
  0x27   : > { %655 = vrot.lane.b32.xlu1 %v1131_v4, %s1019_s24 }
  0x33   : > { %v914_v13 = vpop.eup %913 }
  0x99   : > { %v225_v14 = vpop.permute.xlu0 %224 }
  0x9a   : > { %v1142_v15 = vmul.f32 %v914_v13, %v225_v14 }
  0x9c   : > { %v234_v16 = vand.u32 2147483647, %v1142_v15  ;;  %v237_v17 = vand.u32 2139095040, %v1142_v15  ;;  %vm236_vm14 = vcmp.lt.s32.totalorder %v1142_v15, 0 }
  0x9d   : > { %v230_v18 = vpop.permute.xlu0 %229 }
  0x9e   : > { %v238_v19 = vshrl.u32 %v237_v17, 23  ;;  %v1146_v20 = vmul.f32 %v914_v13, %v230_v18  ;;  %v241_v21 = vand.u32 8388607, %v234_v16  ;;  %vm235_vm15 = vcmp.le.f32.partialorder %v234_v16, 0.7853982 }
  0xa0   : > { %v799_v22 = vadd.s32 4294967169, %v238_v19  ;;  %v340_v23 = vand.u32 2139095040, %v1146_v20  ;;  %v242_v25 = vor.u32 8388608, %v241_v21  ;;  %v337_v27 = vand.u32 2147483647, %v1146_v20 }
  0xa2   : > { %v244_v24 = vadd.s32 1, %v799_v22  ;;  %v341_v26 = vshrl.u32 %v340_v23, 23  ;;  %v1152_v32 = vshll.u32 %v242_v25, 8  ;;  %v344_v36 = vand.u32 8388607, %v337_v27 }
  0xa4   : > { %vm245_vm0 = vcmp.gt.s32.totalorder %v244_v24, 0  ;;  %v803_v29 = vadd.s32 4294967169, %v341_v26  ;;  %v345_v3 = vor.u32 8388608, %v344_v36 }
  0xa5   : > { %v246_v28 = vsel %vm245_vm0, %v244_v24, 0  ;;  %vm339_vm0 = vcmp.lt.s32.totalorder %v1146_v20, 0 }
  0xa6   : > { %v247_v30 = vshrl.u32 %v246_v28, 5  ;;  %v248_v31 = vand.u32 31, %v246_v28  ;;  %v347_v37 = vadd.s32 1, %v803_v29  ;;  %v385_v22 = vshll.u32 %v345_v3, 8 }
  0xa8   : > { %v249_v33 = vsub.s32 32, %v248_v31  ;;  %v251_v35 = vshll.u32 %v1020_v34, %v248_v31  ;;  %v254_v39 = vshll.u32 %v1021_v38, %v248_v31  ;;  %v257_v41 = vshll.u32 %v1022_v40, %v248_v31 }
  0xa9   : > { %v260_v43 = vshll.u32 %v1023_v42, %v248_v31  ;;  %v263_v45 = vshll.u32 %v1024_v44, %v248_v31  ;;  %vm266_vm1 = vcmp.lt.s32.totalorder %v247_v30, 1  ;;  %vm268_vm2 = vcmp.lt.s32.totalorder %v247_v30, 3 }
  0xaa   : > { %v252_v46 = vshrl.u32 %v1021_v38, %v249_v33  ;;  %v255_v47 = vshrl.u32 %v1022_v40, %v249_v33  ;;  %v258_v48 = vshrl.u32 %v1023_v42, %v249_v33  ;;  %v250_v49 = vshrl.u32 %v1020_v34, %v249_v33 }
  0xab   : > { %v261_v50 = vshrl.u32 %v1024_v44, %v249_v33  ;;  %v264_v52 = vshrl.u32 %v1025_v51, %v249_v33  ;;  %vm348_vm3 = vcmp.gt.s32.totalorder %v347_v37, 0  ;;  %vm269_vm4 = vcmp.lt.s32.totalorder %v247_v30, 4 }
  0xac   : > { %v253_v53 = vor.u32 %v252_v46, %v251_v35  ;;  %v256_v54 = vor.u32 %v255_v47, %v254_v39  ;;  %v259_v55 = vor.u32 %v258_v48, %v257_v41  ;;  %v349_v58 = vsel %vm348_vm3, %v347_v37, 0 }
  0xad   : > { %v262_v56 = vor.u32 %v261_v50, %v260_v43  ;;  %v265_v57 = vor.u32 %v264_v52, %v263_v45  ;;  %vm267_vm5 = vcmp.lt.s32.totalorder %v247_v30, 2  ;;  %v351_v9 = vand.u32 31, %v349_v58 }
  0xae   : > { %v270_v59 = vsel %vm266_vm1, %v250_v49, %v253_v53  ;;  %v271_v60 = vsel %vm269_vm4, %v259_v55, 2102212464  ;;  %v274_v61 = vsel %vm266_vm1, %v253_v53, %v256_v54  ;;  %v278_v62 = vsel %vm266_vm1, %v256_v54, %v259_v55 }
  0xaf   : > { %v272_v63 = vsel %vm268_vm2, %v256_v54, %v271_v60  ;;  %v275_v0 = vsel %vm269_vm4, %v262_v56, 920167782  ;;  %v279_v1 = vsel %vm269_vm4, %v265_v57, 1326507024  ;;  %v350_v19 = vshrl.u32 %v349_v58, 5 }
  0xb0   : > { %v276_v5 = vsel %vm268_vm2, %v259_v55, %v275_v0  ;;  %v280_v8 = vsel %vm268_vm2, %v262_v56, %v279_v1  ;;  %v273_v10 = vsel %vm267_vm5, %v270_v59, %v272_v63  ;;  %v352_v21 = vsub.s32 32, %v351_v9 }
  0xb1   : > { %v277_v11 = vsel %vm267_vm5, %v274_v61, %v276_v5  ;;  %v281_v12 = vsel %vm267_vm5, %v278_v62, %v280_v8  ;;  %v289_v23 = vmul.u32 %v1152_v32, %v273_v10  ;;  %v354_v24 = vshll.u32 %v1020_v34, %v351_v9 }
  0xb2   : > { %v1165_v13 = vmul.u32.u64.low %v1152_v32, %v281_v12  ;;  %v1166_v14 = vmul.u32.u64.high %v1152_v32, %v281_v12, %v1165_v13  ;;  %v1169_v17 = vmul.u32.u64.low %v1152_v32, %v277_v11  ;;  %v1170_v18 = vmul.u32.u64.high %v1152_v32, %v277_v11, %v1169_v17 }
  0xb3   : > { %v357_v25 = vshll.u32 %v1021_v38, %v351_v9  ;;  %v360_v26 = vshll.u32 %v1022_v40, %v351_v9  ;;  %v355_v28 = vshrl.u32 %v1021_v38, %v352_v21  ;;  %v358_v29 = vshrl.u32 %v1022_v40, %v352_v21 }
  0xb4   : > { %v361_v30 = vshrl.u32 %v1023_v42, %v352_v21  ;;  %v363_v31 = vshll.u32 %v1023_v42, %v351_v9  ;;  %vm291_vm6 = vc.u32 %v1166_v14, %v1169_v17  ;;  %v292_v33 = vadd.s32 1, %v1170_v18 }
  0xb5   : > { %v364_v35 = vshrl.u32 %v1024_v44, %v352_v21  ;;  %v366_v36 = vshll.u32 %v1024_v44, %v351_v9  ;;  %v356_v37 = vor.u32 %v355_v28, %v354_v24  ;;  %v359_v39 = vor.u32 %v358_v29, %v357_v25 }
  0xb6   : > { %v362_v41 = vor.u32 %v361_v30, %v360_v26  ;;  %v367_v43 = vshrl.u32 %v1025_v51, %v352_v21  ;;  %v293_v32 = vsel %vm291_vm6, %v292_v33, %v1170_v18  ;;  %vm369_vm7 = vcmp.lt.s32.totalorder %v350_v19, 1 }
  0xb7   : > { %v365_v45 = vor.u32 %v364_v35, %v363_v31  ;;  %vm372_vm8 = vcmp.lt.s32.totalorder %v350_v19, 4  ;;  %v294_v38 = vadd.s32 %v293_v32, %v289_v23  ;;  %vm371_vm9 = vcmp.lt.s32.totalorder %v350_v19, 3 }
  0xb8   : > { %v368_v40 = vor.u32 %v367_v43, %v366_v36  ;;  %v374_v42 = vsel %vm372_vm8, %v362_v41, 2102212464  ;;  %v353_v46 = vshrl.u32 %v1020_v34, %v352_v21  ;;  %v377_v47 = vsel %vm369_vm7, %v356_v37, %v359_v39 }
  0xb9   : > { %v378_v48 = vsel %vm372_vm8, %v365_v45, 920167782  ;;  %v381_v49 = vsel %vm369_vm7, %v359_v39, %v362_v41  ;;  %v295_v50 = vadd.s32 536870912, %v294_v38  ;;  %vm370_vm10 = vcmp.lt.s32.totalorder %v350_v19, 2 }
  0xba   : > { %v379_v44 = vsel %vm371_vm9, %v362_v41, %v378_v48  ;;  %v382_v52 = vsel %vm372_vm8, %v368_v40, 1326507024  ;;  %v373_v53 = vsel %vm369_vm7, %v353_v46, %v356_v37  ;;  %v375_v51 = vsel %vm371_vm9, %v359_v39, %v374_v42 }
  0xbb   : > { %v380_v54 = vsel %vm370_vm10, %v377_v47, %v379_v44  ;;  %v383_v55 = vsel %vm371_vm9, %v365_v45, %v382_v52  ;;  %v296_v56 = vshrl.u32 %v295_v50, 30  ;;  %v376_v62 = vsel %vm370_vm10, %v373_v53, %v375_v51 }
  0xbc   : > { %v384_v57 = vsel %vm370_vm10, %v381_v49, %v383_v55  ;;  %v1180_v58 = vmul.u32.u64.low %v385_v22, %v380_v54  ;;  %v1181_v59 = vmul.u32.u64.high %v385_v22, %v380_v54, %v1180_v58  ;;  %v392_v1 = vmul.u32 %v385_v22, %v376_v62 }
  0xbd   : > { %v1183_v60 = vmul.u32.u64.low %v385_v22, %v384_v57  ;;  %v1184_v61 = vmul.u32.u64.high %v385_v22, %v384_v57, %v1183_v60  ;;  %v297_v34 = vshll.u32 %v296_v56, 30  ;;  %v290_v23 = vadd.s32 %v1169_v17, %v1166_v14 }
  0xbe   : > { %v395_v0 = vadd.s32 1, %v1181_v59  ;;  %v320_v40 = vsub.s32 4, %v296_v56  ;;  %vm338_vm1 = vcmp.le.f32.partialorder %v337_v27, 0.7853982  ;;  %vm326_vm8 = vweird.f32 %v1142_v15 }
  0xbf   : > { %v298_v63 = vsub.s32 %v294_v38, %v297_v34  ;;  %vm394_vm11 = vc.u32 %v1184_v61, %v1180_v58  ;;  %v393_v45 = vadd.s32 %v1180_v58, %v1184_v61  ;;  %vm1204_vm9 = vcmp.eq.s32.totalorder %v215_v7, 0 }
  0xc0   : > { %v396_v5 = vsel %vm394_vm11, %v395_v0, %v1181_v59  ;;  %v321_v52 = vsel %vm236_vm14, %v320_v40, %v296_v56 }
  0xc1   : > { %v300_v3 = vsub.s32 0, %v298_v63  ;;  %v397_v8 = vadd.s32 %v396_v5, %v392_v1  ;;  %v323_v55 = vsel %vm235_vm15, 0, %v321_v52 }
  0xc2   : > { %v533_v59 = vadd.s32 3, %v323_v55  ;;  %v327_v34 = vand.u32 3, %v323_v55 }
  0xc3   : > { %v800_v9 = vmin.u32 %v300_v3, %v298_v63  ;;  %v398_v10 = vadd.s32 536870912, %v397_v8 }
  0xc4   : > { %v534_v56 = vand.u32 3, %v533_v59  ;;  %vm332_vm2 = vcmp.eq.s32.totalorder %v327_v34, 2  ;;  %vm329_vm4 = vcmp.eq.s32.totalorder %v327_v34, 0  ;;  %vm328_vm6 = vcmp.lt.s32.totalorder %v327_v34, 2 }
  0xc5   : > { %v302_v11 = vclz %v800_v9  ;;  %v399_v12 = vshrl.u32 %v398_v10, 30 }
  0xc6   : > { %vm539_vm3 = vcmp.eq.s32.totalorder %v534_v56, 2  ;;  %vm536_vm5 = vcmp.eq.s32.totalorder %v534_v56, 0  ;;  %vm535_vm7 = vcmp.lt.s32.totalorder %v534_v56, 2 }
  0xc7   : > { %v801_v13 = vadd.s32 4294967294, %v302_v11  ;;  %v400_v18 = vshll.u32 %v399_v12, 30  ;;  %v423_v60 = vsub.s32 4, %v399_v12  ;;  %v650_v11 = vpop.permute.xlu1 %649 }
  0xc9   : > { %vm802_vm12 = vcmp.lt.s32.totalorder %v801_v13, 0  ;;  %v401_v21 = vsub.s32 %v397_v8, %v400_v18  ;;  %v424_v62 = vsel %vm339_vm0, %v423_v60, %v399_v12 }
  0xca   : > { %v305_v19 = vsel %vm802_vm12, 0, %v801_v13  ;;  %v426_v5 = vsel %vm338_vm1, 0, %v424_v62 }
  0xcb   : > { %v306_v24 = vsub.s32 32, %v305_v19  ;;  %v310_v22 = vsub.s32 4294967266, %v305_v19  ;;  %v403_v25 = vsub.s32 0, %v401_v21  ;;  %v307_v26 = vshll.u32 %v298_v63, %v305_v19 }
  0xcc   : > { %v637_v18 = vadd.s32 3, %v426_v5 }
  0xcd   : > { %v308_v28 = vshrl.u32 %v290_v23, %v306_v24  ;;  %v311_v29 = vadd.s32 127, %v310_v22  ;;  %v804_v30 = vmin.u32 %v403_v25, %v401_v21  ;;  %v654_v23 = vpop.permute.xlu0 %653 }
  0xce   : > { %v659_v25 = vsel %vm1204_vm9, %v650_v11, %v654_v23 }
  0xcf   : > { %v309_v31 = vor.u32 %v308_v28, %v307_v26  ;;  %v312_v33 = vshll.u32 %v311_v29, 23  ;;  %v405_v35 = vclz %v804_v30  ;;  %v430_v26 = vand.u32 3, %v426_v5  ;;  %v652_v30 = vpop.permute.xlu1 %651 }
  0xd0   : > { %v638_v28 = vand.u32 3, %v637_v18 }
  0xd1   : > { %v313_v36 = vor.u32 4788187, %v312_v33  ;;  %v805_v37 = vadd.s32 4294967294, %v405_v35  ;;  %v316_v41 = vcvt.s32.f32 %v309_v31  ;;  %vm435_vm10 = vcmp.eq.s32.totalorder %v430_v26, 2 }
  0xd2   : > { %vm643_vm11 = vcmp.eq.s32.totalorder %v638_v28, 2  ;;  %vm432_vm12 = vcmp.eq.s32.totalorder %v430_v26, 0 }
  0xd3   : > { %v314_v39 = vand.u32 2147483647, %v313_v36  ;;  %vm806_vm13 = vcmp.lt.s32.totalorder %v805_v37, 0 }
  0xd4   : > { %v408_v32 = vsel %vm806_vm13, 0, %v805_v37  ;;  %vm640_vm13 = vcmp.eq.s32.totalorder %v638_v28, 0 }
  0xd5   : > { %v317_v43 = vmul.f32 %v316_v41, %v314_v39  ;;  %v409_v14 = vsub.s32 32, %v408_v32  ;;  %v413_v17 = vsub.s32 4294967266, %v408_v32  ;;  %v410_v42 = vshll.u32 %v401_v21, %v408_v32 }
  0xd7   : > { %v318_v38 = vxor.u32 2147483648, %v317_v43  ;;  %v411_v46 = vshrl.u32 %v393_v45, %v409_v14  ;;  %v414_v47 = vadd.s32 127, %v413_v17  ;;  %v656_v45 = vpop.permute.xlu1 %655 }
  0xd8   : > { %v660_v40 = vsel %vm1204_vm9, %v652_v30, %v656_v45 }
  0xd9   : > { %v319_v48 = vsel %vm236_vm14, %v318_v38, %v317_v43  ;;  %v412_v50 = vor.u32 %v411_v46, %v410_v42  ;;  %v415_v44 = vshll.u32 %v414_v47, 23  ;;  %vm431_vm14 = vcmp.lt.s32.totalorder %v430_v26, 2 }
  0xda   : > { %v322_v49 = vsel %vm235_vm15, %v1142_v15, %v319_v48  ;;  %vm639_vm15 = vcmp.lt.s32.totalorder %v638_v28, 2 }
  0xdb   : > { %915 = vcosq.f32 %v322_v49  ;;  %v416_v53 = vor.u32 4788187, %v415_v44  ;;  %v419_v54 = vcvt.s32.f32 %v412_v50 }
  0xdc   : > { %917 = vsinq.f32 %v322_v49 }
  0xdd   : > { %v417_v51 = vand.u32 2147483647, %v416_v53 }
  0xdf   : > { %v420_v57 = vmul.f32 %v419_v54, %v417_v51 }
  0xe1   : > { %v421_v58 = vxor.u32 2147483648, %v420_v57 }
  0xe3   : > { %v422_v16 = vsel %vm339_vm0, %v421_v58, %v420_v57  ;;  %vm429_vm0 = vweird.f32 %v1146_v20 }
  0xe4   : > { %v425_v61 = vsel %vm338_vm1, %v1146_v20, %v422_v16 }
  0xe5   : > { %919 = vcosq.f32 %v425_v61 }
  0xe6   : > { %921 = vsinq.f32 %v425_v61 }
  0xe8   : > { %v916_v63 = vpop.eup %915 }
  0xe9   : > { %v918_v0 = vpop.eup %917  ;;  %v333_v1 = vxor.u32 2147483648, %v916_v63 }
  0xea   : > { %v330_v3 = vxor.u32 2147483648, %v918_v0 }
  0xeb   : > { %v334_v8 = vsel %vm332_vm2, %v333_v1, %v918_v0  ;;  %v541_v27 = vsel %vm539_vm3, %v333_v1, %v918_v0 }
  0xec   : > { %v331_v9 = vsel %vm329_vm4, %v916_v63, %v330_v3  ;;  %v538_v10 = vsel %vm536_vm5, %v916_v63, %v330_v3 }
  0xed   : > { %v335_v12 = vsel %vm328_vm6, %v331_v9, %v334_v8  ;;  %v542_v13 = vsel %vm535_vm7, %v538_v10, %v541_v27 }
  0xee   : > { %v543_v19 = vsel %vm326_vm8, nan, %v542_v13  ;;  %v336_v24 = vsel %vm326_vm8, nan, %v335_v12 }
  0xef   : > { %v661_v22 = vsub.f32 0.0, %v543_v19  ;;  %v665_v29 = vmul.f32 %v336_v24, %v1128_v2 }
  0xf1   : > { %v663_v15 = vsel %vm1204_vm9, %v661_v22, %v543_v19 }
  0xf2   : > { %v667_v6 = vmul.f32 %v663_v15, %v659_v25  ;;  %v920_v7 = vpop.eup %919 }
  0xf3   : > { %v922_v31 = vpop.eup %921  ;;  %v436_v35 = vxor.u32 2147483648, %v920_v7 }
  0xf4   : > { %v669_v33 = vadd.f32 %v667_v6, %v665_v29  ;;  %v433_v36 = vxor.u32 2147483648, %v922_v31 }
  0xf5   : > { %v437_v37 = vsel %vm435_vm10, %v436_v35, %v922_v31  ;;  %v645_v39 = vsel %vm643_vm11, %v436_v35, %v922_v31 }
  0xf6   : > { %671 = vst [vmem:[%s187_s30] sm:$0xff] %v669_v33  ;;  %v434_v2 = vsel %vm432_vm12, %v920_v7, %v433_v36  ;;  %v642_v41 = vsel %vm640_vm13, %v920_v7, %v433_v36 }
  0xf7   : > { %v438_v43 = vsel %vm431_vm14, %v434_v2, %v437_v37  ;;  %v646_v32 = vsel %vm639_vm15, %v642_v41, %v645_v39 }
  0xf8   : > { %v647_v14 = vsel %vm429_vm0, nan, %v646_v32  ;;  %v439_v17 = vsel %vm429_vm0, nan, %v438_v43 }
  0xf9   : > { %v662_v38 = vsub.f32 0.0, %v647_v14  ;;  %v666_v20 = vmul.f32 %v439_v17, %v1131_v4 }
  0xfb   : > { %v664_v42 = vsel %vm1204_vm9, %v662_v38, %v647_v14 }
  0xfc   : > { %v668_v46 = vmul.f32 %v664_v42, %v660_v40 }
  0xfe   : > { %v670_v47 = vadd.f32 %v668_v46, %v666_v20 }
 0x100   : > { %672 = vst [vmem:[%s187_s30 + $0x8] sm:$0xff] %v670_v47 }
 0x101   : > { %936 = shalt.err (!%p933_p7)
}
 0x102   : > { %s937_s21 = scalar_lea.hbm %s1225_s6, 256  ;;  %s941_s26 = scalar_lea.hbm %s1285_s2, 1536 }
 0x103   : > { %p938_p9 = scmp.ne.s32.totalorder %s1225_s6, %s937_s21  ;;  %p942_p12 = scmp.lt.s32.totalorder %s1225_s6, %s1285_s2 }
 0x104   : > { %p943_p13 = scmp.lt.s32.totalorder %s941_s26, %s937_s21 }
 0x105   : > { %p939_p10 = pnand %p938_p9, %p1095_p3 }
 0x106   : > { %p944_p0 = por %p943_p13, %p942_p12 }
 0x107   : > { %p940_p11 = pneg %p939_p10 }
 0x109   : > { %p945_p1 = pnand %p944_p0, %p940_p11 }
 0x10b   : > { %948 = shalt.err (!%p945_p1)
}
 0x10c   : > { %s1027_s3 = smov 128   ;;  %s1028_s13 = smov 8  }
 0x10d   : > { %830 = dma.vmem_to_hbm [thread:$0]  (%p1095_p3), %s1228_s4, 256, %s1225_s6, %s1232_s7, %s1027_s3, %s1027_s3, %s1028_s13  }
 0x10e PF: > { %p836_p2 = scmp.ge.s32.totalorder %s1015_s16, 2  ;;  %s704_s28 = sand.u32 1, %s987_s9  }
 0x10f   : > { %s705_s5 = scalar_lea.sflag [#allocation3], %s704_s28 }
 0x110   : > { %p833_p4 = pnand %p836_p2, %p1104_p8 }
 0x112   : > { %p834_p5 = pneg %p833_p4 }
 0x114   : > { %982 = dma.done.wait (%p834_p5), %s705_s5, 256  }
 0x115   : > { %984 = vsyncadd (%p834_p5), %s705_s5, 4294967040  ;;  %s15_s16 = sadd.s32 1, %s1015_s16   ;;  %s1290_s9 = smov %s991_s10 }
 0x116   : > { %p12_p6 = scmp.ge.s32.totalorder %s15_s16, 8   ;;  %s1291_s10 = smov %s995_s11 }
 0x117   : > { %s1292_s11 = smov %s1113_s27  ;;  %s1293_s12 = smov %s1007_s14 }
 0x118   : > { %s1294_s13 = smov %s1011_s15  ;;  %s1295_s14 = smov %s1298_s19 }
 0x119   : > { %s1296_s15 = smov %s1302_s20  ;;  %14 = sbr.rel (!%p12_p6) target bundleno = 5 (0x5), region = 66 }
 0x11e   :  { %710 = vsyncpa [#allocation3], 1 }
 0x11f   :  { %712 = vsyncpa [#allocation3 + $0x1], 1 }

// kernel: tpu_custom_call.1
= control target key start
LH: loop header
LB: loop body
LE: loop exit
PB: predicated region body
PF: predicated region fallthrough
CT: control target
= control target key end

     0   :  { %s1070_s0 = inlined_call_operand.hbm [shape: f32[2,48,128], index: 0, kind: input, shape index: {}]   ;;  %s1071_s1 = inlined_call_operand.hbm [shape: f32[2,48,128], index: 1, kind: input, shape index: {}]   ;;  %s1072_s2 = inlined_call_operand.hbm [shape: f32[2,48,128], index: 2, kind: input, shape index: {}]   ;;  %s1073_s3 = inlined_call_operand.hbm [shape: f32[2,48,128], index: 3, kind: output, shape index: {}]  }
   0x1   :  { %1081 = sst [smem:[#allocation17_spill]] %s1070_s0 }
   0x2   :  { %1082 = sst [smem:[#allocation18_spill]] %s1071_s1 }
   0x3   :  { %8 = vsyncpa [#allocation3], 0 }
   0x4   :  { %10 = vsyncpa [#allocation3 + $0x1], 0 }
   0x5   :  { %11 = vsyncpa [#allocation6], 0 }
   0x6   :  { %13 = vsyncpa [#allocation6 + $0x1], 0 }
   0x7   :  { %14 = vsyncpa [#allocation4], 0 }
   0x8   :  { %16 = vsyncpa [#allocation4 + $0x1], 0  ;;  %s822_s12 = smov 0   ;;  %s824_s13 = smov 0  }
   0x9   :  { %s826_s14 = smov 0   ;;  %s828_s15 = smov 0  }
   0xa   :  { %s830_s16 = smov 0   ;;  %s832_s17 = smov 0  }
   0xb   :  { %s834_s18 = smov 0   ;;  %s836_s19 = smov 0  }
   0xc LB: > { %1083 = sst [smem:[#allocation12_spill]] %s782_s17  ;;  %s863_s20 = sadd.s32 4294967295, %s790_s19   ;;  %s790_s19 = sphi %s836_s19, %s22_s19   ;;  %s786_s18 = sphi %s834_s18, %s1104_s18   ;;  %s782_s17 = sphi %s832_s17, %s1103_s17   ;;  %s778_s16 = sphi %s830_s16, %s1102_s16   ;;  %s774_s15 = sphi %s828_s15, %s1101_s15   ;;  %s770_s14 = sphi %s826_s14, %s1107_s14   ;;  %s766_s13 = sphi %s824_s13, %s1106_s13   ;;  %s762_s12 = sphi %s822_s12, %s1105_s12  }
   0xd   : > { %1084 = sst [smem:[#allocation13_spill]] %s786_s18  ;;  %s486_s21 = sadd.s32 4294967294, %s790_s19  }
   0xe   : > { %s31_s22 = sadd.s32 1, %s782_s17  ;;  %s34_s23 = sadd.s32 1, %s786_s18 }
   0xf   : > { %p32_p0 = scmp.ge.s32.totalorder %s31_s22, 3  ;;  %s43_s24 = sadd.s32 1, %s770_s14 }
  0x10   : > { %p50_p1 = scmp.ne.s32.totalorder %s770_s14, %s766_s13  ;;  %p51_p2 = scmp.eq.s32.totalorder %s790_s19, 0 }
  0x11   : > { %s1109_s22 = smov (%p32_p0, %s31_s22), 0  ;;  %s1111_s23 = smov (!%p32_p0, %s34_s23), %s786_s18 }
  0x12   : > { %1085 = sst [smem:[#allocation14_spill]] %s1109_s22  ;;  %s39_s25 = ssub.s32 %s782_s17, %s1109_s22 }
  0x13   : > { %p877_p3 = por %p51_p2, %p50_p1  ;;  %p36_p4 = scmp.ge.s32.totalorder %s1111_s23, 2 }
  0x14   : > { %p56_p5 = scmp.ne.s32.totalorder %s766_s13, %s762_s12  ;;  %p57_p6 = scmp.eq.s32.totalorder %s863_s20, 0 }
  0x15   : > { %p138_p7 = scmp.eq.s32.totalorder %s863_s20, 5  ;;  %s1113_s23 = smov (%p36_p4, %s1111_s23), 0 }
  0x16   : > { %1087 = sst [smem:[#allocation15_spill]] %s1113_s23  ;;  %p887_p8 = por %p57_p6, %p56_p5 }
  0x17   : > { %p891_p9 = por %p138_p7, %p50_p1  ;;  %s38_s29 = ssub.s32 %s786_s18, %s1113_s23 }
  0x18   : > { %p144_p10 = scmp.eq.s32.totalorder %s486_s21, 5  ;;  %s40_s30 = sor.u32 %s39_s25, %s38_s29 }
  0x19   : > { %p41_p11 = scmp.eq.s32.totalorder %s40_s30, 0  ;;  %p534_p13 = scmp.lt.s32.totalorder %s790_s19, 6 }
  0x1a   : > { %p897_p12 = por %p144_p10, %p56_p5  ;;  %s1074_s5 = sand.u32 1, %s770_s14  }
  0x1b   : > { %s904_s6 = scalar_select %p41_p11, %s770_s14, %s43_s24  }
  0x1c   : > { %s908_s7 = sshll.u32 %s1074_s5, 4  ;;  %s490_s8 = sshll.u32 %s782_s17, 1 }
  0x1d   : > { %1091 = sst [smem:[#allocation16_spill]] %s904_s6  ;;  %s508_s9 = smul.u32 6, %s786_s18 }
  0x1e   : > { %p914_p0 = pnand %p534_p13, %p877_p3  ;;  %s187_s25 = sand.u32 1, %s790_s19  }
  0x1f   : > { %s174_s11 = sadd.s32 %s508_s9, %s490_s8  ;;  %s1093_s1 = sld [smem:[#allocation18_spill]] }
  0x20   : > { %s918_s21 = sshll.u32 %s174_s11, 7  ;;  %s191_s5 = scalar_lea.vmem [#allocation5], %s908_s7 }
  0x21   : > { %s200_s23 = sshll.u32 %s191_s5, 4  ;;  %p498_p1 = scmp.ge.s32.totalorder %s790_s19, 1  ;;  %s201_s23 = int_to_ptr.vmem [resolvable:$true] %s200_s23 }
  0x22   : > { %s927_s26 = scalar_lea.sflag [#allocation6], %s187_s25  ;;  %p608_p2 = pneg %p914_p0 }
  0x23   : > { %s619_s22 = scalar_lea.vmem %s201_s23, 256  ;;  %s792_s8 = smov [#allocation5]  }
  0x24   : > { %p620_p3 = scmp.ne.s32.totalorder %s201_s23, %s619_s22  ;;  %s624_s9 = sshll.u32 %s792_s8, 4  ;;  %s625_s9 = int_to_ptr.vmem [resolvable:$false] %s624_s9 }
  0x25   : > { %s199_s30 = scalar_lea.hbm %s1093_s1, %s918_s21  ;;  %s626_s11 = scalar_lea.vmem %s625_s9, 512 }
  0x26   : > { %p622_p4 = pnand %p620_p3, %p608_p2  ;;  %p627_p6 = scmp.lt.s32.totalorder %s201_s23, %s625_s9 }
  0x27   : > { %p628_p7 = scmp.lt.s32.totalorder %s626_s11, %s619_s22 }
  0x28   : > { %p623_p5 = pneg %p622_p4 }
  0x29   : > { %p629_p10 = por %p628_p7, %p627_p6 }
  0x2b   : > { %p630_p11 = pnand %p629_p10, %p623_p5 }
  0x2d   : > { %633 = shalt.err (!%p630_p11)
}
  0x2e   : > { %s1079_s5 = smov 128   ;;  %s794_s25 = smov 8  }
  0x2f   : > { %526 = dma.hbm_to_vmem [thread:$0]  (!%p914_p0), %s199_s30, 256, %s201_s23, %s927_s26, %s1079_s5, %s1079_s5, %s794_s25  }
  0x30   : > { %p231_p13 = scmp.lt.s32.totalorder %s790_s19, 7  ;;  %s1095_s0 = sld [smem:[#allocation17_spill]] }
  0x31   : > { %s168_s9 = scalar_lea.vmem [#allocation2], %s908_s7  ;;  %s1096_s1 = sand.u32 1, %s770_s14  }
  0x32   : > { %p943_p3 = pnand %p498_p1, %p231_p13  ;;  %s177_s11 = sshll.u32 %s168_s9, 4  ;;  %s178_s11 = int_to_ptr.vmem [resolvable:$true] %s177_s11 }
  0x33   : > { %s165_s18 = scalar_lea.sflag [#allocation3], %s1096_s1  ;;  %s647_s17 = scalar_lea.vmem %s178_s11, 256 }
  0x34   : > { %p648_p4 = scmp.ne.s32.totalorder %s178_s11, %s647_s17  ;;  %s795_s23 = smov [#allocation2]  }
  0x35   : > { %s652_s30 = sshll.u32 %s795_s23, 4  ;;  %s653_s30 = int_to_ptr.vmem [resolvable:$false] %s652_s30 }
  0x36   : > { %s176_s8 = scalar_lea.hbm %s1095_s0, %s918_s21  ;;  %p650_p5 = pnand %p648_p4, %p608_p2 }
  0x37   : > { %s654_s5 = scalar_lea.vmem %s653_s30, 512  ;;  %p655_p1 = scmp.lt.s32.totalorder %s178_s11, %s653_s30 }
  0x38   : > { %p651_p6 = pneg %p650_p5  ;;  %p656_p7 = scmp.lt.s32.totalorder %s654_s5, %s647_s17 }
  0x3a   : > { %p657_p10 = por %p656_p7, %p655_p1 }
  0x3c   : > { %p658_p11 = pnand %p657_p10, %p651_p6 }
  0x3e   : > { %661 = shalt.err (!%p658_p11)
}
  0x3f   : > { %s1097_s24 = smov 128   ;;  %s222_s9 = scalar_lea.hbm %s1072_s2, %s918_s21 }
  0x40   : > { %523 = dma.hbm_to_vmem [thread:$0]  (!%p914_p0), %s176_s8, 256, %s178_s11, %s165_s18, %s1097_s24, %s1097_s24, %s794_s25  }
  0x41   : > { %s214_s23 = scalar_lea.vmem [#allocation7], %s908_s7  ;;  %s796_s5 = smov [#allocation7]  }
  0x42   : > { %s223_s0 = sshll.u32 %s214_s23, 4  ;;  %s680_s30 = sshll.u32 %s796_s5, 4  ;;  %s224_s0 = int_to_ptr.vmem [resolvable:$true] %s223_s0  ;;  %s681_s30 = int_to_ptr.vmem [resolvable:$false] %s680_s30 }
  0x43   : > { %s675_s17 = scalar_lea.vmem %s224_s0, 256  ;;  %s682_s6 = scalar_lea.vmem %s681_s30, 512 }
  0x44   : > { %p676_p13 = scmp.ne.s32.totalorder %s224_s0, %s675_s17  ;;  %p683_p6 = scmp.lt.s32.totalorder %s224_s0, %s681_s30 }
  0x45   : > { %p684_p1 = scmp.lt.s32.totalorder %s682_s6, %s675_s17 }
  0x46   : > { %p678_p4 = pnand %p676_p13, %p608_p2 }
  0x47   : > { %p685_p7 = por %p684_p1, %p683_p6 }
  0x48   : > { %p679_p5 = pneg %p678_p4 }
  0x4a   : > { %p686_p10 = pnand %p685_p7, %p679_p5 }
  0x4c   : > { %689 = shalt.err (!%p686_p10)
}
  0x4d   : > { %529 = dma.hbm_to_vmem [thread:$0]  (!%p914_p0), %s222_s9, 256, %s224_s0, %s927_s26, %s1097_s24, %s1097_s24, %s794_s25  }
  0x4e   : > { %235 = sbr.rel (%p943_p3) target bundleno = 226 (0xe2), region = 32  ;;  %s979_s18 = sand.u32 (!%p943_p3), 1, %s766_s13  }
  0x4f   : > { %s982_s6 = sshll.u32 (!%p943_p3), %s979_s18, 4  ;;  %s238_s7 = scalar_lea.sflag (!%p943_p3), [#allocation3], %s979_s18 }
  0x50   : > { %s241_s21 = scalar_lea.vmem (!%p943_p3), [#allocation2], %s982_s6 }
  0x53   : > { %749 = dma.done.wait (%p887_p8), %s238_s7, 256  }
  0x54   : > { %751 = vsyncadd (%p887_p8), %s238_s7, 4294967040  ;;  %s246_s0 = sand.u32 1, %s863_s20   ;;  %s250_s26 = scalar_lea.vmem [#allocation5], %s982_s6 }
  0x55   : > { %s247_s10 = scalar_lea.sflag [#allocation6], %s246_s0 }
  0x56   : > { %753 = dma.done.wait (%p887_p8), %s247_s10, 512  }
  0x57   : > { %755 = vsyncadd (%p887_p8), %s247_s10, 4294966784  ;;  %v296_v0 = vld [vmem:[%s241_s21] sm:$0xff]  ;;  %s797_s25 = smov 1   ;;  %s798_s22 = smov 127   ;;  %v297_v1 = vld [vmem:[%s241_s21 + $0x8] sm:$0xff]  ;;  %v302_v2 = vlaneseq }
  0x58   : > { %310 = vrot.lane.b32.xlu1 %v296_v0, %s797_s25  ;;  %306 = vrot.lane.b32.xlu0 %v296_v0, %s798_s22  ;;  %s259_s20 = scalar_lea.vmem [#allocation7], %s982_s6  ;;  %v298_v9 = vld [vmem:[%s250_s26] sm:$0xff]  ;;  %s511_s27 = smul.u32 6, %s778_s16  ;;  %v299_v15 = vld [vmem:[%s250_s26 + $0x8] sm:$0xff] }
  0x59   : > { %v303_v3 = vand.u32 127, %v302_v2  ;;  %v300_v4 = vld [vmem:[%s259_s20] sm:$0xff]  ;;  %v301_v8 = vld [vmem:[%s259_s20 + $0x8] sm:$0xff]  ;;  %s504_s8 = sshll.u32 %s774_s15, 1  ;;  %v322_v12 = vmul.f32 %v298_v9, %v296_v0  ;;  %s291_s24 = scalar_lea.vmem [#allocation8], %s982_s6  ;;  %v323_v19 = vmul.f32 %v299_v15, %v297_v1 }
  0x5a   : > { %v318_v6 = vsub.f32 0.0, %v300_v4  ;;  %v319_v11 = vsub.f32 0.0, %v301_v8  ;;  %s343_s11 = sadd.s32 %s511_s27, %s504_s8  ;;  %s346_s1 = sshll.u32 %s291_s24, 4  ;;  %s1012_s1 = int_to_ptr.vmem [resolvable:$true] %s346_s1 }
  0x5b   : > { %v304_v5 = vand.u32 1, %v303_v3  ;;  %s505_s15 = sshll.u32 %s343_s11, 7  ;;  %s331_s23 = scalar_lea.sflag [#allocation4], %s979_s18 }
  0x5c   : > { %312 = vrot.lane.b32.xlu1 %v297_v1, %s797_s25  ;;  %308 = vrot.lane.b32.xlu0 %v297_v1, %s798_s22  ;;  %s1017_s9 = scalar_lea.hbm %s1073_s3, %s505_s15  ;;  %s690_s17 = scalar_lea.vmem %s1012_s1, 256 }
  0x5d   : > { %vm997_vm0 = vcmp.eq.s32.totalorder %v304_v5, 0  ;;  %p691_p8 = scmp.ne.s32.totalorder %s1012_s1, %s690_s17  ;;  %s799_s5 = smov [#allocation8]  }
  0x5e   : > { %v320_v10 = vsel %vm997_vm0, %v318_v6, %v300_v4  ;;  %v321_v18 = vsel %vm997_vm0, %v319_v11, %v301_v8  ;;  %s694_s30 = sshll.u32 %s799_s5, 4  ;;  %s695_s30 = int_to_ptr.vmem [resolvable:$false] %s694_s30 }
  0x5f   : > { %p692_p0 = pnand %p691_p8, %p891_p9  ;;  %s696_s6 = scalar_lea.vmem %s695_s30, 512 }
  0x60   : > { %p697_p3 = scmp.lt.s32.totalorder %s1012_s1, %s695_s30  ;;  %p698_p11 = scmp.lt.s32.totalorder %s696_s6, %s690_s17 }
  0x61   : > { %p693_p2 = pneg %p692_p0 }
  0x62   : > { %p699_p13 = por %p698_p11, %p697_p3 }
  0x64   : > { %p700_p4 = pnand %p699_p13, %p693_p2 }
  0xca   : > { %v311_v13 = vpop.permute.xlu1 %310  ;;  %v307_v14 = vpop.permute.xlu0 %306 }
  0xcb   : > { %v316_v16 = vsel %vm997_vm0, %v307_v14, %v311_v13 }
  0xcc   : > { %v324_v17 = vmul.f32 %v320_v10, %v316_v16 }
  0xce   : > { %v326_v20 = vadd.f32 %v324_v17, %v322_v12  ;;  %v313_v21 = vpop.permute.xlu1 %312  ;;  %v309_v22 = vpop.permute.xlu0 %308 }
  0xcf   : > { %v317_v23 = vsel %vm997_vm0, %v309_v22, %v313_v21 }
  0xd0   : > { %328 = vst [vmem:[%s291_s24] sm:$0xff] %v326_v20  ;;  %v325_v24 = vmul.f32 %v321_v18, %v317_v23 }
  0xd2   : > { %v327_v25 = vadd.f32 %v325_v24, %v323_v19 }
  0xd4   : > { %329 = vst [vmem:[%s291_s24 + $0x8] sm:$0xff] %v327_v25 }
  0xd5   : > { %703 = shalt.err (!%p700_p4)
}
  0xd6   : > { %s704_s7 = scalar_lea.hbm %s1017_s9, 256  ;;  %s708_s10 = scalar_lea.hbm %s1073_s3, 1536 }
  0xd7   : > { %p705_p5 = scmp.ne.s32.totalorder %s1017_s9, %s704_s7  ;;  %p709_p7 = scmp.lt.s32.totalorder %s1017_s9, %s1073_s3 }
  0xd8   : > { %p710_p10 = scmp.lt.s32.totalorder %s708_s10, %s704_s7 }
  0xd9   : > { %p706_p6 = pnand %p705_p5, %p891_p9 }
  0xda   : > { %p711_p8 = por %p710_p10, %p709_p7 }
  0xdb   : > { %p707_p1 = pneg %p706_p6 }
  0xdd   : > { %p712_p0 = pnand %p711_p8, %p707_p1 }
  0xdf   : > { %715 = shalt.err (!%p712_p0)
}
  0xe0   : > { %s800_s22 = smov 128   ;;  %s801_s20 = smov 8  }
  0xe1   : > { %518 = dma.vmem_to_hbm [thread:$0]  (%p891_p9), %s1012_s1, 256, %s1017_s9, %s331_s23, %s800_s22, %s800_s22, %s801_s20  }
  0xe2 PF: > { %p535_p2 = scmp.ge.s32.totalorder %s790_s19, 2  ;;  %s361_s27 = sand.u32 1, %s762_s12  }
  0xe3   : > { %s362_s8 = scalar_lea.sflag [#allocation4], %s361_s27 }
  0xe4   : > { %p531_p3 = pnand %p535_p2, %p897_p12 }
  0xe6   : > { %p532_p11 = pneg %p531_p3 }
  0xe8   : > { %757 = dma.done.wait (%p532_p11), %s362_s8, 256  }
  0xe9   : > { %759 = vsyncadd (%p532_p11), %s362_s8, 4294967040  ;;  %s22_s19 = sadd.s32 1, %s790_s19   ;;  %s1100_s28 = sld [smem:[#allocation16_spill]] }
  0xea   : > { %p19_p13 = scmp.ge.s32.totalorder %s22_s19, 8   ;;  %s1101_s15 = sld [smem:[#allocation12_spill]] }
  0xeb   : > { %s1102_s16 = sld [smem:[#allocation13_spill]]  ;;  %s1105_s12 = smov %s766_s13 }
  0xec   : > { %s1103_s17 = sld [smem:[#allocation14_spill]]  ;;  %s1106_s13 = smov %s770_s14 }
  0xed   : > { %s1104_s18 = sld [smem:[#allocation15_spill]]  ;;  %21 = sbr.rel (!%p19_p13) target bundleno = 12 (0xc), region = 101 }
  0xef   : > { %s1107_s14 = smov %s1100_s28 }
  0xf2   :  { %367 = vsyncpa [#allocation3], 1 }
  0xf3   :  { %369 = vsyncpa [#allocation3 + $0x1], 1 }
  0xf4   :  { %370 = vsyncpa [#allocation6], 1 }
  0xf5   :  { %372 = vsyncpa [#allocation6 + $0x1], 1 }
  0xf6   :  { %373 = vsyncpa [#allocation4], 1 }
  0xf7   :  { %375 = vsyncpa [#allocation4 + $0x1], 1 }

</bundles_post_ra>
